<compile_context>
chip_gen: v7x
topology: tpu7x:2x2x1
jax: 0.10.0
libtpu: 0.0.40
codegen_flags: <defaults>
</compile_context>

<pallas_src>
import functools
import math

import jax
import jax.numpy as jnp
from jax import lax
from jax.experimental import pallas as pl
from jax.experimental.pallas import tpu as pltpu


def _flash_attn_kernel(q_ref, k_ref, v_ref, o_ref,
                       qs_sc, m_sc, l_sc, acc_sc, *,
                       scale_factor, kv_len, block_k, compute_dtype):
    """One (batch*head, q-tile, kv-tile) grid step of flash attention.

    Block shapes: q_ref (1, tq, D), k_ref (1, tk, D), v_ref (1, tk, Dv),
    o_ref (1, tq, Dv).  Grid axis 2 (KV) is the reduction axis.
    """
    ki = pl.program_id(2)

    @pl.when(ki == 0)
    def _init():
        # Hoisted once per q block: scale in f32, then cast for the MXU.
        q = q_ref[0].astype(jnp.float32)
        if scale_factor is not None:
            q = q * jnp.float32(scale_factor)
        qs_sc[...] = q.astype(compute_dtype)
        m_sc[...] = jnp.full_like(m_sc, -jnp.inf)
        l_sc[...] = jnp.zeros_like(l_sc)
        acc_sc[...] = jnp.zeros_like(acc_sc)

    q = qs_sc[...]                                    # (tq, D), pre-scaled
    k = k_ref[0].astype(compute_dtype)                # (tk, D)

    # q @ k^T contracting on D (no explicit transpose), f32 accumulation.
    s = lax.dot_general(q, k, (((1,), (1,)), ((), ())),
                        preferred_element_type=jnp.float32)   # (tq, tk) f32

    if kv_len % block_k != 0:
        # Ragged last KV tile: mask out-of-range key columns.  Compile-time
        # branch; only emitted when the KV length does not divide the tile.
        col = ki * block_k + lax.broadcasted_iota(jnp.int32, s.shape, 1)
        s = jnp.where(col < kv_len, s, jnp.float32(-1e30))

    # Online (numerically stable) softmax update, all in f32.
    m_prev = m_sc[...]
    m_new = jnp.maximum(m_prev, jnp.max(s, axis=-1, keepdims=True))
    alpha = jnp.exp(m_prev - m_new)                   # (tq, 1)
    p = jnp.exp(s - m_new)                            # (tq, tk)

    l_sc[...] = alpha * l_sc[...] + jnp.sum(p, axis=-1, keepdims=True)
    acc_sc[...] = alpha * acc_sc[...] + jnp.dot(
        p.astype(compute_dtype), v_ref[0].astype(compute_dtype),
        preferred_element_type=jnp.float32)
    m_sc[...] = m_new

    # dropout_p == 0 in the reference module -> identity.
    # TODO(synk): non-zero dropout_p would need pltpu.prng_random_bits masking.

    @pl.when(ki == pl.num_programs(2) - 1)
    def _finalize():
        inv_l = pl.reciprocal(l_sc[...], approx=True)     # EUP slot, ~free
        o_ref[0] = (acc_sc[...] * inv_l).astype(o_ref.dtype)


def _round_up(x, m):
    return ((x + m - 1) // m) * m


def sdpa_pallas(query, key, value, scale_factor=None, *,
                block_q=512, block_k=256, use_bf16_matmul=True):
    """Scaled dot-product attention matching the PyTorch Model.forward."""
    B, H, Sq, D = query.shape
    Bk, Hk, Skv, Dk = key.shape
    Bv, Hv, Skv_v, Dv = value.shape
    assert (B, H, D) == (Bk, Hk, Dk) and (B, H, Skv) == (Bv, Hv, Skv_v)

    BH = B * H
    out_dtype = query.dtype
    if use_bf16_matmul and query.dtype == jnp.float32:
        compute_dtype = jnp.bfloat16
    else:
        compute_dtype = query.dtype

    # Big q tile / modest kv tile (K+V HBM traffic ~ 1/block_q); both
    # multiples of 8 (sublane dim); D / Dv stay full (lane dim).
    tq = min(block_q, _round_up(Sq, 8))
    tk = min(block_k, _round_up(Skv, 8))
    Sq_p = _round_up(Sq, tq)
    Skv_p = _round_up(Skv, tk)
    nq = Sq_p // tq
    nkv = Skv_p // tk

    q3 = query.reshape(BH, Sq, D)
    k3 = key.reshape(BH, Skv, D)
    v3 = value.reshape(BH, Skv, Dv)
    if Sq_p != Sq:
        q3 = jnp.pad(q3, ((0, 0), (0, Sq_p - Sq), (0, 0)))
    if Skv_p != Skv:
        k3 = jnp.pad(k3, ((0, 0), (0, Skv_p - Skv), (0, 0)))
        v3 = jnp.pad(v3, ((0, 0), (0, Skv_p - Skv), (0, 0)))

    kernel = functools.partial(
        _flash_attn_kernel, scale_factor=scale_factor, kv_len=Skv,
        block_k=tk, compute_dtype=compute_dtype)

    grid_spec = pltpu.PrefetchScalarGridSpec(
        num_scalar_prefetch=0,
        grid=(BH, nq, nkv),                          # KV reduction axis last
        in_specs=[
            pl.BlockSpec((1, tq, D), lambda bh, qi, ki: (bh, qi, 0)),    # q
            pl.BlockSpec((1, tk, D), lambda bh, qi, ki: (bh, ki, 0)),    # k
            pl.BlockSpec((1, tk, Dv), lambda bh, qi, ki: (bh, ki, 0)),   # v
        ],
        out_specs=pl.BlockSpec((1, tq, Dv), lambda bh, qi, ki: (bh, qi, 0)),
        scratch_shapes=[
            pltpu.VMEM((tq, D), compute_dtype),      # pre-scaled / cast q
            pltpu.VMEM((tq, 1), jnp.float32),        # running max  m
            pltpu.VMEM((tq, 1), jnp.float32),        # running sum  l
            pltpu.VMEM((tq, Dv), jnp.float32),       # running numerator acc
        ],
    )

    in_b = jnp.dtype(query.dtype).itemsize
    c_b = jnp.dtype(compute_dtype).itemsize
    # Rough per-step VMEM budget (double-buffered I/O + scratch + s/p temps).
    vmem_est = (2 * (tq * D + tk * D + tk * Dv + tq * Dv) * in_b
                + tq * D * c_b
                + (2 * tq * 128 + tq * max(Dv, 128)) * 4
                + 3 * tq * tk * 4)
    compiler_kwargs = dict(
        dimension_semantics=("parallel", "parallel", "arbitrary"))
    if vmem_est > 24 * 1024 * 1024:
        # Raise scoped VMEM only when needed; cap at 64 MiB so it fits v7x.
        compiler_kwargs["vmem_limit_bytes"] = min(
            int(vmem_est * 1.5), 64 * 1024 * 1024)

    cost = pl.CostEstimate(
        flops=int(2 * BH * Sq * Skv * (D + Dv)),
        transcendentals=int(BH * Sq * Skv),
        bytes_accessed=int((q3.size + k3.size + v3.size) * in_b
                           + BH * Sq * Dv * jnp.dtype(out_dtype).itemsize))

    out3 = pl.pallas_call(
        kernel,
        out_shape=jax.ShapeDtypeStruct((BH, Sq_p, Dv), out_dtype),
        grid_spec=grid_spec,
        compiler_params=pltpu.CompilerParams(**compiler_kwargs),
        cost_estimate=cost,
    )(q3, k3, v3)

    if Sq_p != Sq:
        out3 = out3[:, :Sq, :]
    return out3.reshape(B, H, Sq, Dv)


def sdpa_reference(query, key, value, scale_factor=None):
    qk = jnp.matmul(query, jnp.swapaxes(key, -2, -1))
    if scale_factor is not None:
        qk = qk * scale_factor
    p = jax.nn.softmax(qk, axis=-1)
    return jnp.matmul(p, value)


if __name__ == "__main__":
    root = jax.random.PRNGKey(0)

    # --- Test 1: small shapes per the module's forward; scale path; bf16 MXU.
    B, H, S, D = 2, 4, 8, 32
    k1, k2, k3, root = jax.random.split(root, 4)
    q = jax.random.normal(k1, (B, H, S, D), dtype=jnp.float32)
    k = jax.random.normal(k2, (B, H, S, D), dtype=jnp.float32)
    v = jax.random.normal(k3, (B, H, S, D), dtype=jnp.float32)
    scale = 1.0 / math.sqrt(D)
    out = jax.block_until_ready(sdpa_pallas(q, k, v, scale_factor=scale))
    ref = sdpa_reference(q, k, v, scale_factor=scale)
    assert out.shape == (B, H, S, D)
    assert jnp.allclose(out, ref, atol=2e-2, rtol=2e-2), "mismatch (test 1)"

    # --- Test 2: multi-block KV (online-softmax accumulation), bf16 MXU path.
    B, H, S, D = 1, 2, 256, 32
    k1, k2, k3, root = jax.random.split(root, 4)
    q = jax.random.normal(k1, (B, H, S, D), dtype=jnp.float32)
    k = jax.random.normal(k2, (B, H, S, D), dtype=jnp.float32)
    v = jax.random.normal(k3, (B, H, S, D), dtype=jnp.float32)
    scale = 1.0 / math.sqrt(D)
    out = jax.block_until_ready(
        sdpa_pallas(q, k, v, scale_factor=scale, block_q=128, block_k=128))
    ref = sdpa_reference(q, k, v, scale_factor=scale)
    assert jnp.allclose(out, ref, atol=2e-2, rtol=2e-2), "mismatch (test 2)"

    # --- Test 3: ragged sequence (masked last KV tile), no scale, f32 MXU path.
    B, H, S, D = 1, 2, 200, 32
    k1, k2, k3, root = jax.random.split(root, 4)
    q = jax.random.normal(k1, (B, H, S, D), dtype=jnp.float32)
    k = jax.random.normal(k2, (B, H, S, D), dtype=jnp.float32)
    v = jax.random.normal(k3, (B, H, S, D), dtype=jnp.float32)
    out = jax.block_until_ready(
        sdpa_pallas(q, k, v, scale_factor=None, block_q=128, block_k=128,
                    use_bf16_matmul=False))
    ref = sdpa_reference(q, k, v, scale_factor=None)
    assert jnp.allclose(out, ref, atol=3e-3, rtol=3e-3), "mismatch (test 3)"

    print("KERNEL_OK")
</pallas_src>

<mosaic_0001>
module attributes {stable_mosaic.version = 11 : i64} {
  func.func @_flash_attn_kernel(%arg0: i32, %arg1: i32, %arg2: i32, %arg3: memref<1x8x32xf32, #tpu.memory_space<vmem>>, %arg4: memref<1x8x32xf32, #tpu.memory_space<vmem>>, %arg5: memref<1x8x32xf32, #tpu.memory_space<vmem>>, %arg6: memref<1x8x32xf32, #tpu.memory_space<vmem>>, %arg7: memref<8x32xbf16, #tpu.memory_space<vmem>>, %arg8: memref<8x1xf32, #tpu.memory_space<vmem>>, %arg9: memref<8x1xf32, #tpu.memory_space<vmem>>, %arg10: memref<8x32xf32, #tpu.memory_space<vmem>>) attributes {dimension_semantics = [#tpu.dimension_semantics<parallel>, #tpu.dimension_semantics<parallel>, #tpu.dimension_semantics<arbitrary>], iteration_bounds = array<i64: 8, 1, 1>, scalar_prefetch = 0 : i64, scratch_operands = 4 : i64, tpu.core_type = #tpu.core_type<tc>, window_params = [{transform_indices = @transform_0, window_bounds = array<i64: 1, 8, 32>}, {transform_indices = @transform_1, window_bounds = array<i64: 1, 8, 32>}, {transform_indices = @transform_2, window_bounds = array<i64: 1, 8, 32>}, {transform_indices = @transform_3, window_bounds = array<i64: 1, 8, 32>}]} {
    %c0_i32 = arith.constant 0 : i32
    %0 = arith.cmpi eq, %arg2, %c0_i32 : i32
    %1 = arith.extui %0 : i1 to i32
    %c0_i32_0 = arith.constant 0 : i32
    %2 = arith.cmpi ne, %1, %c0_i32_0 : i32
    scf.if %2 {
      %c0_25 = arith.constant 0 : index
      %c0_26 = arith.constant 0 : index
      %c0_27 = arith.constant 0 : index
      %37 = vector.load %arg3[%c0_25, %c0_26, %c0_27] : memref<1x8x32xf32, #tpu.memory_space<vmem>>, vector<1x8x32xf32>
      %38 = vector.shape_cast %37 : vector<1x8x32xf32> to vector<8x32xf32>
      %cst_28 = arith.constant 0.176776692 : f32
      %39 = vector.broadcast %cst_28 : f32 to vector<8x32xf32>
      %40 = arith.mulf %38, %39 : vector<8x32xf32>
      %41 = arith.truncf %40 : vector<8x32xf32> to vector<8x32xbf16>
      %c0_29 = arith.constant 0 : index
      %c0_30 = arith.constant 0 : index
      %42 = vector.load %arg7[%c0_29, %c0_30] : memref<8x32xbf16, #tpu.memory_space<vmem>>, vector<8x32xbf16>
      tpu.vector_store %arg7[%c0_29, %c0_30], %41 {strides = array<i32>} : memref<8x32xbf16, #tpu.memory_space<vmem>>, vector<8x32xbf16>,
      %cst_31 = arith.constant 0xFF800000 : f32
      %43 = vector.broadcast %cst_31 : f32 to vector<8x1xf32>
      %c0_32 = arith.constant 0 : index
      %c0_33 = arith.constant 0 : index
      %44 = vector.load %arg8[%c0_32, %c0_33] : memref<8x1xf32, #tpu.memory_space<vmem>>, vector<8x1xf32>
      tpu.vector_store %arg8[%c0_32, %c0_33], %43 {strides = array<i32>} : memref<8x1xf32, #tpu.memory_space<vmem>>, vector<8x1xf32>,
      %cst_34 = arith.constant 0.000000e+00 : f32
      %45 = vector.broadcast %cst_34 : f32 to vector<8x1xf32>
      %c0_35 = arith.constant 0 : index
      %c0_36 = arith.constant 0 : index
      %46 = vector.load %arg9[%c0_35, %c0_36] : memref<8x1xf32, #tpu.memory_space<vmem>>, vector<8x1xf32>
      tpu.vector_store %arg9[%c0_35, %c0_36], %45 {strides = array<i32>} : memref<8x1xf32, #tpu.memory_space<vmem>>, vector<8x1xf32>,
      %cst_37 = arith.constant 0.000000e+00 : f32
      %47 = vector.broadcast %cst_37 : f32 to vector<8x32xf32>
      %c0_38 = arith.constant 0 : index
      %c0_39 = arith.constant 0 : index
      %48 = vector.load %arg10[%c0_38, %c0_39] : memref<8x32xf32, #tpu.memory_space<vmem>>, vector<8x32xf32>
      tpu.vector_store %arg10[%c0_38, %c0_39], %47 {strides = array<i32>} : memref<8x32xf32, #tpu.memory_space<vmem>>, vector<8x32xf32>,
    } else {
    }
    %c0 = arith.constant 0 : index
    %c0_1 = arith.constant 0 : index
    %3 = vector.load %arg7[%c0, %c0_1] : memref<8x32xbf16, #tpu.memory_space<vmem>>, vector<8x32xbf16>
    %c0_2 = arith.constant 0 : index
    %c0_3 = arith.constant 0 : index
    %c0_4 = arith.constant 0 : index
    %4 = vector.load %arg4[%c0_2, %c0_3, %c0_4] : memref<1x8x32xf32, #tpu.memory_space<vmem>>, vector<1x8x32xf32>
    %5 = vector.shape_cast %4 : vector<1x8x32xf32> to vector<8x32xf32>
    %6 = arith.truncf %5 : vector<8x32xf32> to vector<8x32xbf16>
    %cst = arith.constant dense<0.000000e+00> : vector<8x8xf32>
    %7 = tpu.matmul %3, %6, %cst {dimension_numbers = #tpu.dot_dimension_numbers<[1], [1], [0], [0], [0, 0, 1, 0], [], []>} : vector<8x32xbf16>, vector<8x32xbf16>, vector<8x8xf32> -> vector<8x8xf32>
    %c0_5 = arith.constant 0 : index
    %c0_6 = arith.constant 0 : index
    %8 = vector.load %arg8[%c0_5, %c0_6] : memref<8x1xf32, #tpu.memory_space<vmem>>, vector<8x1xf32>
    %cst_7 = arith.constant dense<0xFF800000> : vector<8xf32>
    %9 = vector.multi_reduction <maximumf>, %7, %cst_7 [1] : vector<8x8xf32> to vector<8xf32>
    %10 = vector.shape_cast %9 : vector<8xf32> to vector<8x1xf32>
    %11 = arith.maximumf %8, %10 : vector<8x1xf32>
    %12 = arith.subf %8, %11 : vector<8x1xf32>
    %13 = math.exp %12 : vector<8x1xf32>
    %14 = vector.broadcast %11 : vector<8x1xf32> to vector<8x8xf32>
    %15 = arith.subf %7, %14 : vector<8x8xf32>
    %16 = math.exp %15 : vector<8x8xf32>
    %c0_8 = arith.constant 0 : index
    %c0_9 = arith.constant 0 : index
    %17 = vector.load %arg9[%c0_8, %c0_9] : memref<8x1xf32, #tpu.memory_space<vmem>>, vector<8x1xf32>
    %18 = arith.mulf %13, %17 : vector<8x1xf32>
    %cst_10 = arith.constant dense<0.000000e+00> : vector<8xf32>
    %19 = vector.multi_reduction <add>, %16, %cst_10 [1] : vector<8x8xf32> to vector<8xf32>
    %20 = vector.shape_cast %19 : vector<8xf32> to vector<8x1xf32>
    %21 = arith.addf %18, %20 : vector<8x1xf32>
    %c0_11 = arith.constant 0 : index
    %c0_12 = arith.constant 0 : index
    %22 = vector.load %arg9[%c0_11, %c0_12] : memref<8x1xf32, #tpu.memory_space<vmem>>, vector<8x1xf32>
    tpu.vector_store %arg9[%c0_11, %c0_12], %21 {strides = array<i32>} : memref<8x1xf32, #tpu.memory_space<vmem>>, vector<8x1xf32>,
    %c0_13 = arith.constant 0 : index
    %c0_14 = arith.constant 0 : index
    %23 = vector.load %arg10[%c0_13, %c0_14] : memref<8x32xf32, #tpu.memory_space<vmem>>, vector<8x32xf32>
    %24 = vector.broadcast %13 : vector<8x1xf32> to vector<8x32xf32>
    %25 = arith.mulf %24, %23 : vector<8x32xf32>
    %26 = arith.truncf %16 : vector<8x8xf32> to vector<8x8xbf16>
    %c0_15 = arith.constant 0 : index
    %c0_16 = arith.constant 0 : index
    %c0_17 = arith.constant 0 : index
    %27 = vector.load %arg5[%c0_15, %c0_16, %c0_17] : memref<1x8x32xf32, #tpu.memory_space<vmem>>, vector<1x8x32xf32>
    %28 = vector.shape_cast %27 : vector<1x8x32xf32> to vector<8x32xf32>
    %29 = arith.truncf %28 : vector<8x32xf32> to vector<8x32xbf16>
    %cst_18 = arith.constant dense<0.000000e+00> : vector<8x32xf32>
    %30 = tpu.matmul %26, %29, %cst_18 {dimension_numbers = #tpu.dot_dimension_numbers<[1], [0], [0], [1], [0, 0, 1, 1], [], []>} : vector<8x8xbf16>, vector<8x32xbf16>, vector<8x32xf32> -> vector<8x32xf32>
    %31 = arith.addf %25, %30 : vector<8x32xf32>
    %c0_19 = arith.constant 0 : index
    %c0_20 = arith.constant 0 : index
    %32 = vector.load %arg10[%c0_19, %c0_20] : memref<8x32xf32, #tpu.memory_space<vmem>>, vector<8x32xf32>
    tpu.vector_store %arg10[%c0_19, %c0_20], %31 {strides = array<i32>} : memref<8x32xf32, #tpu.memory_space<vmem>>, vector<8x32xf32>,
    %c0_21 = arith.constant 0 : index
    %c0_22 = arith.constant 0 : index
    %33 = vector.load %arg8[%c0_21, %c0_22] : memref<8x1xf32, #tpu.memory_space<vmem>>, vector<8x1xf32>
    tpu.vector_store %arg8[%c0_21, %c0_22], %11 {strides = array<i32>} : memref<8x1xf32, #tpu.memory_space<vmem>>, vector<8x1xf32>,
    %c0_i32_23 = arith.constant 0 : i32
    %34 = arith.cmpi eq, %arg2, %c0_i32_23 : i32
    %35 = arith.extui %34 : i1 to i32
    %c0_i32_24 = arith.constant 0 : i32
    %36 = arith.cmpi ne, %35, %c0_i32_24 : i32
    scf.if %36 {
      %c0_25 = arith.constant 0 : index
      %c0_26 = arith.constant 0 : index
      %37 = vector.load %arg9[%c0_25, %c0_26] : memref<8x1xf32, #tpu.memory_space<vmem>>, vector<8x1xf32>
      %38 = tpu.reciprocal %37 {approx = true} : vector<8x1xf32> -> vector<8x1xf32>
      %c0_27 = arith.constant 0 : index
      %c0_28 = arith.constant 0 : index
      %39 = vector.load %arg10[%c0_27, %c0_28] : memref<8x32xf32, #tpu.memory_space<vmem>>, vector<8x32xf32>
      %40 = vector.broadcast %38 : vector<8x1xf32> to vector<8x32xf32>
      %41 = arith.mulf %39, %40 : vector<8x32xf32>
      %c0_29 = arith.constant 0 : index
      %c0_30 = arith.constant 0 : index
      %c0_31 = arith.constant 0 : index
      %42 = vector.load %arg6[%c0_29, %c0_30, %c0_31] : memref<1x8x32xf32, #tpu.memory_space<vmem>>, vector<1x8x32xf32>
      %43 = vector.shape_cast %42 : vector<1x8x32xf32> to vector<8x32xf32>
      %44 = vector.shape_cast %41 : vector<8x32xf32> to vector<1x8x32xf32>
      tpu.vector_store %arg6[%c0_29, %c0_30, %c0_31], %44 {strides = array<i32>} : memref<1x8x32xf32, #tpu.memory_space<vmem>>, vector<1x8x32xf32>,
    } else {
    }
    return
  }
  func.func @transform_0(%arg0: i32, %arg1: i32, %arg2: i32) -> (i32, i32, i32) {
    %c0_i32 = arith.constant 0 : i32
    %c0_i32_0 = arith.constant 0 : i32
    return %arg0, %arg1, %c0_i32 : i32, i32, i32
  }
  func.func @transform_1(%arg0: i32, %arg1: i32, %arg2: i32) -> (i32, i32, i32) {
    %c0_i32 = arith.constant 0 : i32
    %c0_i32_0 = arith.constant 0 : i32
    return %arg0, %arg2, %c0_i32 : i32, i32, i32
  }
  func.func @transform_2(%arg0: i32, %arg1: i32, %arg2: i32) -> (i32, i32, i32) {
    %c0_i32 = arith.constant 0 : i32
    %c0_i32_0 = arith.constant 0 : i32
    return %arg0, %arg2, %c0_i32 : i32, i32, i32
  }
  func.func @transform_3(%arg0: i32, %arg1: i32, %arg2: i32) -> (i32, i32, i32) {
    %c0_i32 = arith.constant 0 : i32
    %c0_i32_0 = arith.constant 0 : i32
    return %arg0, %arg1, %c0_i32 : i32, i32, i32
  }
}

</mosaic_0001>

<bundles_post_ra>
// kernel: tpu_custom_call.1
= control target key start
LH: loop header
LB: loop body
LE: loop exit
PB: predicated region body
PF: predicated region fallthrough
CT: control target
= control target key end

     0   :  { %s1194_s0 = inlined_call_operand.hbm [shape: f32[8,8,32], index: 0, kind: input, shape index: {}]   ;;  %s1195_s1 = inlined_call_operand.hbm [shape: f32[8,8,32], index: 1, kind: input, shape index: {}]   ;;  %s1196_s2 = inlined_call_operand.hbm [shape: f32[8,8,32], index: 2, kind: input, shape index: {}]   ;;  %s1197_s3 = inlined_call_operand.hbm [shape: f32[8,8,32], index: 3, kind: output, shape index: {}]  }
   0x1   :  { %1203 = sst [smem:[#allocation19_spill]] %s1195_s1 }
   0x2   :  { %8 = vsyncpa [#allocation7], 0 }
   0x3   :  { %10 = vsyncpa [#allocation7 + $0x1], 0 }
   0x4   :  { %11 = vsyncpa [#allocation10], 0 }
   0x5   :  { %13 = vsyncpa [#allocation10 + $0x1], 0 }
   0x6   :  { %14 = vsyncpa [#allocation8], 0 }
   0x7   :  { %16 = vsyncpa [#allocation8 + $0x1], 0  ;;  %s920_s12 = smov 0   ;;  %s922_s13 = smov 0  }
   0x8   :  { %s924_s14 = smov 0   ;;  %s926_s15 = smov 0  }
   0x9   :  { %s928_s16 = smov 0   ;;  %s930_s17 = smov 0  }
   0xa LB: > { %1204 = sst [smem:[#allocation16_spill]] %s886_s16  ;;  %s951_s18 = sadd.s32 4294967295, %s890_s17   ;;  %s890_s17 = sphi %s930_s17, %s22_s17   ;;  %s886_s16 = sphi %s928_s16, %s1224_s16   ;;  %s882_s15 = sphi %s926_s15, %s1223_s15   ;;  %s878_s14 = sphi %s924_s14, %s1227_s14   ;;  %s874_s13 = sphi %s922_s13, %s1226_s13   ;;  %s870_s12 = sphi %s920_s12, %s1225_s12  }
   0xb   : > { %s594_s19 = sadd.s32 4294967294, %s890_s17   ;;  %s41_s20 = sadd.s32 1, %s886_s16 }
   0xc   : > { %s50_s21 = sadd.s32 1, %s878_s14  ;;  %p43_p0 = scmp.ge.s32.totalorder %s41_s20, 8 }
   0xd   : > { %p57_p1 = scmp.ne.s32.totalorder %s878_s14, %s874_s13  ;;  %p58_p2 = scmp.eq.s32.totalorder %s890_s17, 0 }
   0xe   : > { %p63_p3 = scmp.ne.s32.totalorder %s874_s13, %s870_s12  ;;  %s1229_s20 = smov (%p43_p0, %s41_s20), 0 }
   0xf   : > { %1205 = sst [smem:[#allocation17_spill]] %s1229_s20  ;;  %p963_p4 = por %p58_p2, %p57_p1 }
  0x10   : > { %p64_p5 = scmp.eq.s32.totalorder %s951_s18, 0  ;;  %s45_s23 = ssub.s32 %s886_s16, %s1229_s20 }
  0x11   : > { %p145_p6 = scmp.eq.s32.totalorder %s951_s18, 7  ;;  %p48_p7 = scmp.eq.s32.totalorder %s45_s23, 0 }
  0x12   : > { %p971_p8 = por %p64_p5, %p63_p3  ;;  %p151_p10 = scmp.eq.s32.totalorder %s594_s19, 7 }
  0x13   : > { %p975_p9 = por %p145_p6, %p57_p1  ;;  %p652_p12 = scmp.lt.s32.totalorder %s890_s17, 8 }
  0x14   : > { %s1207_s24 = scalar_select %p971_p8, 1, 0 }
  0x15   : > { %s1208_s25 = scalar_select %p975_p9, 1, 0 }
  0x16   : > { %s980_s26 = scalar_select %p48_p7, %s878_s14, %s50_s21  }
  0x17   : > { %p982_p11 = por %p151_p10, %p63_p3  ;;  %s171_s28 = sand.u32 1, %s878_s14  }
  0x18   : > { %1209 = sst [smem:[#allocation18_spill]] %s980_s26  ;;  %s990_s29 = sshll.u32 %s171_s28, 3 }
  0x19   : > { %s1210_s27 = scalar_select %p982_p11, 1, 0 }
  0x1a   : > { %s993_s30 = sshll.u32 %s886_s16, 7  ;;  %p997_p13 = pnand %p652_p12, %p963_p4 }
  0x1b   : > { %s190_s5 = sand.u32 1, %s890_s17   ;;  %s1212_s1 = sld [smem:[#allocation19_spill]] }
  0x1c   : > { %s1211_s4 = scalar_select %p997_p13, 1, 0 }
  0x1d   : > { %s194_s9 = scalar_lea.vmem [#allocation9], %s990_s29  ;;  %s1013_s11 = scalar_lea.sflag [#allocation10], %s190_s5 }
  0x1e   : > { %s202_s10 = sshll.u32 %s194_s9, 4  ;;  %p1019_p3 = pneg %p997_p13  ;;  %s1010_s10 = int_to_ptr.vmem [resolvable:$true] %s202_s10 }
  0x21   : > { %s1006_s8 = scalar_lea.hbm %s1212_s1, %s993_s30  ;;  %s719_s6 = scalar_lea.hbm %s1212_s1, 1024 }
  0x22   : > { %s714_s19 = scalar_lea.hbm %s1006_s8, 128  ;;  %p720_p6 = scmp.lt.u32.totalorder %s1006_s8, %s1212_s1 }
  0x23   : > { %p715_p2 = scmp.ne.s32.totalorder %s1006_s8, %s714_s19  ;;  %p721_p7 = scmp.lt.u32.totalorder %s719_s6, %s714_s19 }
  0x24   : > { %p723_p12 = scmp.lt.u32.totalorder %s714_s19, %s1006_s8 }
  0x25   : > { %p717_p4 = pnand %p1019_p3, %p715_p2  ;;  %p722_p10 = por %p721_p7, %p720_p6 }
  0x27   : > { %p718_p5 = pneg %p717_p4  ;;  %p724_p0 = por %p723_p12, %p722_p10 }
  0x29   : > { %p725_p1 = pnand %p724_p0, %p718_p5 }
  0x2b   : > { %728 = shalt.err (!%p725_p1)
}
  0x2c   : > { %s729_s5 = scalar_lea.vmem %s1010_s10, 128  ;;  %s892_s22 = smov [#allocation9]  }
  0x2d   : > { %p730_p2 = scmp.ne.s32.totalorder %s1010_s10, %s729_s5  ;;  %s734_s23 = sshll.u32 %s892_s22, 4  ;;  %s735_s23 = int_to_ptr.vmem [resolvable:$false] %s734_s23 }
  0x2e   : > { %s736_s7 = scalar_lea.vmem %s735_s23, 256  ;;  %p737_p9 = scmp.lt.s32.totalorder %s1010_s10, %s735_s23 }
  0x2f   : > { %p732_p4 = pnand %p730_p2, %p1019_p3  ;;  %p738_p8 = scmp.lt.s32.totalorder %s736_s7, %s729_s5 }
  0x31   : > { %p733_p11 = pneg %p732_p4  ;;  %p739_p6 = por %p738_p8, %p737_p9 }
  0x33   : > { %p740_p7 = pnand %p739_p6, %p733_p11 }
  0x35   : > { %743 = shalt.err (!%p740_p7)
}
  0x36   : > { %644 = dma.hbm_to_vmem [thread:$0]  (!%p997_p13), %s1006_s8, 128, %s1010_s10, %s1013_s11  }
  0x37   : > { %p1214_p0 = scmp.lt.s32.totalorder %s890_s17, 9  ;;  %p1215_p1 = scmp.ge.s32.totalorder %s890_s17, 1 }
  0x38   : > { %s1055_s5 = scalar_lea.hbm %s1194_s0, %s993_s30  ;;  %s175_s22 = scalar_lea.vmem [#allocation6], %s990_s29 }
  0x39   : > { %p1047_p5 = pnand %p1215_p1, %p1214_p0  ;;  %s183_s23 = sshll.u32 %s175_s22, 4  ;;  %s1058_s23 = int_to_ptr.vmem [resolvable:$true] %s183_s23 }
  0x3a   : > { %s1064_s7 = scalar_lea.hbm %s1196_s2, %s993_s30  ;;  %s172_s1 = scalar_lea.sflag [#allocation7], %s171_s28 }
  0x3b   : > { %s1216_s19 = scalar_select %p1047_p5, 1, 0 }
  0x3c   : > { %s744_s20 = scalar_lea.hbm %s1055_s5, 128  ;;  %s749_s16 = scalar_lea.hbm %s1194_s0, 1024 }
  0x3d   : > { %p745_p8 = scmp.ne.s32.totalorder %s1055_s5, %s744_s20  ;;  %p750_p10 = scmp.lt.u32.totalorder %s1055_s5, %s1194_s0 }
  0x3e   : > { %p751_p12 = scmp.lt.u32.totalorder %s749_s16, %s744_s20  ;;  %p753_p4 = scmp.lt.u32.totalorder %s744_s20, %s1055_s5 }
  0x3f   : > { %p747_p9 = pnand %p745_p8, %p1019_p3 }
  0x40   : > { %p752_p2 = por %p751_p12, %p750_p10 }
  0x41   : > { %p748_p11 = pneg %p747_p9 }
  0x42   : > { %p754_p6 = por %p753_p4, %p752_p2 }
  0x44   : > { %p755_p7 = pnand %p754_p6, %p748_p11 }
  0x46   : > { %758 = shalt.err (!%p755_p7)
}
  0x47   : > { %s759_s28 = scalar_lea.vmem %s1058_s23, 128  ;;  %s893_s30 = smov [#allocation6]  }
  0x48   : > { %p760_p0 = scmp.ne.s32.totalorder %s1058_s23, %s759_s28  ;;  %s764_s8 = sshll.u32 %s893_s30, 4  ;;  %s765_s8 = int_to_ptr.vmem [resolvable:$false] %s764_s8 }
  0x49   : > { %s766_s26 = scalar_lea.vmem %s765_s8, 256  ;;  %p767_p9 = scmp.lt.s32.totalorder %s1058_s23, %s765_s8 }
  0x4a   : > { %p762_p1 = pnand %p760_p0, %p1019_p3  ;;  %p768_p5 = scmp.lt.s32.totalorder %s766_s26, %s759_s28 }
  0x4c   : > { %p763_p8 = pneg %p762_p1  ;;  %p769_p10 = por %p768_p5, %p767_p9 }
  0x4e   : > { %p770_p12 = pnand %p769_p10, %p763_p8 }
  0x50   : > { %773 = shalt.err (!%p770_p12)
}
  0x51   : > { %641 = dma.hbm_to_vmem [thread:$0]  (!%p997_p13), %s1055_s5, 128, %s1058_s23, %s172_s1  }
  0x52   : > { %s213_s16 = scalar_lea.vmem [#allocation11], %s990_s29  ;;  %s774_s10 = scalar_lea.hbm %s1064_s7, 128 }
  0x53   : > { %s221_s20 = sshll.u32 %s213_s16, 4  ;;  %p775_p11 = scmp.ne.s32.totalorder %s1064_s7, %s774_s10  ;;  %s222_s20 = int_to_ptr.vmem [resolvable:$true] %s221_s20 }
  0x54   : > { %s779_s22 = scalar_lea.hbm %s1196_s2, 1024  ;;  %p780_p4 = scmp.lt.u32.totalorder %s1064_s7, %s1196_s2 }
  0x55   : > { %p777_p5 = pnand %p775_p11, %p1019_p3  ;;  %p781_p6 = scmp.lt.u32.totalorder %s779_s22, %s774_s10 }
  0x56   : > { %p783_p0 = scmp.lt.u32.totalorder %s774_s10, %s1064_s7 }
  0x57   : > { %p778_p2 = pneg %p777_p5  ;;  %p782_p7 = por %p781_p6, %p780_p4 }
  0x59   : > { %p784_p1 = por %p783_p0, %p782_p7 }
  0x5b   : > { %p785_p8 = pnand %p784_p1, %p778_p2 }
  0x5d   : > { %788 = shalt.err (!%p785_p8)
}
  0x5e   : > { %s789_s1 = scalar_lea.vmem %s222_s20, 128  ;;  %s894_s29 = smov [#allocation11]  }
  0x5f   : > { %p790_p9 = scmp.ne.s32.totalorder %s222_s20, %s789_s1  ;;  %s794_s5 = sshll.u32 %s894_s29, 4  ;;  %s795_s5 = int_to_ptr.vmem [resolvable:$false] %s794_s5 }
  0x60   : > { %s796_s23 = scalar_lea.vmem %s795_s5, 256  ;;  %p797_p11 = scmp.lt.s32.totalorder %s222_s20, %s795_s5 }
  0x61   : > { %p792_p10 = pnand %p790_p9, %p1019_p3  ;;  %p798_p5 = scmp.lt.s32.totalorder %s796_s23, %s789_s1 }
  0x63   : > { %p793_p12 = pneg %p792_p10  ;;  %p799_p13 = por %p798_p5, %p797_p11 }
  0x65   : > { %p800_p4 = pnand %p799_p13, %p793_p12 }
  0x67   : > { %803 = shalt.err (!%p800_p4)
}
  0x68   : > { %p1217_p6 = scmp.ne.s32.totalorder %s1211_s4, 0  ;;  %p1218_p2 = scmp.ne.s32.totalorder %s1216_s19, 0 }
  0x69   : > { %s1111_s21 = sand.u32 (!%p1218_p2), 1, %s874_s13   ;;  %p1219_p13 = scmp.ne.s32.totalorder (!%p1218_p2), %s1207_s24, 0 }
  0x6a   : > { %647 = dma.hbm_to_vmem [thread:$0]  (!%p1217_p6), %s1064_s7, 128, %s222_s20, %s1013_s11  }
  0x6b   : > { %230 = sbr.rel (%p1218_p2) target bundleno = 939 (0x3ab), region = 32  ;;  %s1114_s8 = sshll.u32 (!%p1218_p2), %s1111_s21, 3 }
  0x6c   : > { %s233_s26 = scalar_lea.sflag (!%p1218_p2), [#allocation7], %s1111_s21  ;;  %s236_s16 = scalar_lea.vmem (!%p1218_p2), [#allocation6], %s1114_s8 }
  0x72   : > { %857 = dma.done.wait (%p1219_p13), %s233_s26, 128  }
  0x73   : > { %859 = vsyncadd (%p1219_p13), %s233_s26, 4294967168  ;;  %s241_s4 = sand.u32 1, %s951_s18   ;;  %s245_s19 = scalar_lea.vmem [#allocation9], %s1114_s8 }
  0x74   : > { %s242_s11 = scalar_lea.sflag [#allocation10], %s241_s4 }
  0x75   : > { %861 = dma.done.wait (%p1219_p13), %s242_s11, 256  }
  0x76   : > { %863 = vsyncadd (%p1219_p13), %s242_s11, 4294967040  ;;  %vm300_vm0 = vcmask 261120   ;;  %v895_v0 = vmov 0.0   ;;  %vm896_vm1 = vmmov 0   ;;  %v303_v1 = vld [vmem:[%s245_s19] sm:$0xff]  ;;  %v292_v2 = vld [vmem:[%s236_s16] sm:$0xff] }
  0x77   : > { %618 = vmatprep.subr.bf16.mxu0 %v895_v0  ;;  %301 = vst.msk [vmem:[#allocation5] sm:$0xff] %vm300_vm0, %v895_v0  ;;  %620 = vmatprep.mubr.msk.bf16.mxu0 %vm896_vm1, %v895_v0  ;;  %v304_v3 = vpack.c.bf16 %v303_v1, %v303_v1  ;;  %v293_v4 = vmul.f32 0.17677669, %v292_v2  ;;  %vm295_vm2 = vcmask 257024   ;;  %vm297_vm3 = vcmask 7168   ;;  %s254_s18 = scalar_lea.vmem [#allocation11], %s1114_s8 }
  0x78   : > { %624 = vmatprep.subr.bf16.mxu1 %v895_v0  ;;  %626 = vmatprep.mubr.msk.bf16.mxu1 %vm896_vm1, %v895_v0  ;;  %v897_v8 = vmov -inf   ;;  %299 = vst.msk [vmem:[#allocation4] sm:$0xff] %vm297_vm3, %v895_v0  ;;  %vm353_vm4 = vcmask 64512   ;;  %v898_v14 = vmov 0   ;;  %v385_v19 = vld [vmem:[%s254_s18] sm:$0xff]  ;;  %vm390_vm5 = vcmask 1043456  }
  0x79   : > { %v310_v5 = vsel %vm300_vm0, %v304_v3, 0  ;;  %v294_v6 = vpack.c.bf16 %v293_v4, %v293_v4  ;;  %298 = vst.msk [vmem:[#allocation3] sm:$0xff] %vm297_vm3, %v897_v8  ;;  %706 = vset.pattern.permute.xlu0 %v898_v14  ;;  %707 = vset.pattern.permute.xlu1 %v898_v14  ;;  %v386_v20 = vpack.c.bf16 %v385_v19, %v385_v19  ;;  %s611_s24 = sshll.u32 %s882_s15, 7  ;;  %s286_s7 = scalar_lea.vmem [#allocation12], %s1114_s8 }
  0x7a   : > { %619 = vmatpush3.bf16.xpose.msra.mxu0 %v310_v5  ;;  %s465_s20 = sshll.u32 %s286_s7, 4  ;;  %s1145_s9 = scalar_lea.hbm %s1197_s3, %s611_s24  ;;  %s1147_s20 = int_to_ptr.vmem [resolvable:$true] %s465_s20 }
  0x7b   : > { %296 = vst.msk [vmem:[#allocation2] sm:$0xf] %vm295_vm2, %v294_v6  ;;  %v392_v21 = vsel %vm390_vm5, %v386_v20, 0  ;;  %s451_s22 = scalar_lea.sflag [#allocation8], %s1111_s21  ;;  %s804_s28 = scalar_lea.vmem %s1147_s20, 128 }
  0x7c   : > { %625 = vmatpush3.bf16.msra.mxu1 %v392_v21  ;;  %p805_p3 = scmp.ne.s32.totalorder %s1147_s20, %s804_s28  ;;  %p1220_p7 = scmp.ne.s32.totalorder %s1208_s25, 0 }
  0x7d   : > { %s899_s15 = smov [#allocation12]  }
  0x7e   : > { %v377_v36 = vld [vmem:[#allocation5] sm:$0xff]  ;;  %p806_p0 = pnand %p805_p3, %p1220_p7  ;;  %s808_s30 = sshll.u32 %s899_s15, 4  ;;  %s809_s30 = int_to_ptr.vmem [resolvable:$false] %s808_s30 }
  0x7f   : > { %v369_v30 = vld [vmem:[#allocation4] sm:$0xff]  ;;  %s810_s1 = scalar_lea.vmem %s809_s30, 256  ;;  %p811_p8 = scmp.lt.s32.totalorder %s1147_s20, %s809_s30 }
  0x80   : > { %v352_v15 = vld [vmem:[#allocation3] sm:$0xff]  ;;  %p807_p1 = pneg %p806_p0  ;;  %p812_p9 = scmp.lt.s32.totalorder %s810_s1, %s804_s28 }
  0x82   : > { %v302_v7 = vld [vmem:[#allocation2] sm:$0xf]  ;;  %p813_p10 = por %p812_p9, %p811_p8 }
  0x83   : > { %621 = vmatmul.mubr.msk.bf16.vlgmr.msra.gmra.mrb[0].mxu0 %vm300_vm0, %v302_v7 }
  0x84   : > { %p814_p12 = pnand %p813_p10, %p807_p1 }
 0x156   : > { %v346_v9 = vpop.f32.mrb[0].mxu0 }
 0x157   : > { %v622_v10 = vpop.f32.mrb[1].mxu0  ;;  %v354_v11 = vsel %vm353_vm4, %v346_v9, -inf }
 0x158   : > { %355 = vmax.xlane.f32.xlu0 %v354_v11  ;;  %v349_v12 = vpop.f32.mrb[2].mxu0 }
 0x159   : > { %v623_v13 = vpop.f32.mrb[3].mxu0 }
 0x1e5   : > { %v356_v16 = vpop.xlane.xlu0 %355 }
 0x1e6   : > { %v357_v17 = vmax.f32 %v352_v15, %v356_v16 }
 0x1e8   : > { %v358_v18 = vsub.f32 %v352_v15, %v357_v17  ;;  %436 = vst.msk [vmem:[#allocation3] sm:$0xff] %vm297_vm3, %v357_v17  ;;  %363 = vperm.xlu0 %706, %v357_v17  }
 0x1ea   : > { %v359_v28 = vmul.f32 1.442695, %v358_v18 }
 0x267   : > { %v364_v22 = vpop.permute.xlu0 %363 }
 0x268   : > { %v366_v23 = vsub.f32 %v346_v9, %v364_v22 }
 0x26a   : > { %v367_v24 = vmul.f32 1.442695, %v366_v23 }
 0x26c   : > { %708 = vpow2.f32 %v367_v24 }
 0x26d   : > { %710 = vpow2.f32 %v359_v28 }
 0x276   : > { %v709_v25 = vpop.eup %708 }
 0x277   : > { %v371_v26 = vsel %vm353_vm4, %v709_v25, 0.0  ;;  %v384_v27 = vpack.c.bf16 %v709_v25, %v709_v25  ;;  %v711_v29 = vpop.eup %710 }
 0x278   : > { %372 = vadd.xlane.f32.xlu1 %v371_v26  ;;  %v370_v31 = vmul.f32 %v711_v29, %v369_v30 }
 0x279   : > { %627 = vmatmul.mubr.msk.bf16.vlgmr.msra.gmra.mrb[0].mxu1 %vm353_vm4, %v384_v27 }
 0x289   : > { %380 = vperm.xlu1 %707, %v711_v29  }
 0x305   : > { %v373_v32 = vpop.xlane.xlu1 %372 }
 0x306   : > { %v374_v33 = vadd.f32 %v373_v32, %v370_v31 }
 0x308   : > { %376 = vst.msk [vmem:[#allocation4] sm:$0xff] %vm297_vm3, %v374_v33 }
 0x309   : > { %v381_v37 = vpop.permute.xlu1 %380 }
 0x30a   : > { %v383_v38 = vmul.f32 %v381_v37, %v377_v36 }
 0x30f   : > { %v440_v34 = vld [vmem:[#allocation4] sm:$0xff] }
 0x310   : > { %712 = vrcp.f32 %v440_v34 }
 0x31a   : > { %v713_v35 = vpop.eup %712 }
 0x31b   : > { %445 = vperm.xlu1 %707, %v713_v35  }
 0x34c   : > { %v428_v39 = vpop.f32.mrb[0].mxu1 }
 0x34d   : > { %v434_v40 = vadd.f32 %v428_v39, %v383_v38  ;;  %v628_v41 = vpop.f32.mrb[1].mxu1 }
 0x34e   : > { %v431_v42 = vpop.f32.mrb[2].mxu1 }
 0x34f   : > { %435 = vst.msk [vmem:[#allocation5] sm:$0xff] %vm300_vm0, %v434_v40  ;;  %v629_v43 = vpop.f32.mrb[3].mxu1 }
 0x356   : > { %v442_v44 = vld [vmem:[#allocation5] sm:$0xff] }
 0x39a   : > { %v446_v45 = vpop.permute.xlu1 %445 }
 0x39b   : > { %v448_v46 = vmul.f32 %v446_v45, %v442_v44 }
 0x39d   : > { %449 = vst.msk [vmem:[%s286_s7] sm:$0xff] %vm300_vm0, %v448_v46 }
 0x39e   : > { %817 = shalt.err (!%p814_p12)
}
 0x39f   : > { %s818_s29 = scalar_lea.hbm %s1145_s9, 128  ;;  %s822_s21 = scalar_lea.hbm %s1197_s3, 1024 }
 0x3a0   : > { %p819_p11 = scmp.ne.s32.totalorder %s1145_s9, %s818_s29  ;;  %p823_p6 = scmp.lt.u32.totalorder %s1145_s9, %s1197_s3 }
 0x3a1   : > { %p824_p2 = scmp.lt.u32.totalorder %s822_s21, %s818_s29  ;;  %p826_p3 = scmp.lt.u32.totalorder %s818_s29, %s1145_s9 }
 0x3a2   : > { %p820_p5 = pnand %p819_p11, %p1220_p7 }
 0x3a3   : > { %p825_p13 = por %p824_p2, %p823_p6 }
 0x3a4   : > { %p821_p4 = pneg %p820_p5 }
 0x3a5   : > { %p827_p0 = por %p826_p3, %p825_p13 }
 0x3a7   : > { %p828_p1 = pnand %p827_p0, %p821_p4 }
 0x3a9   : > { %831 = shalt.err (!%p828_p1)
}
 0x3aa   : > { %636 = dma.vmem_to_hbm [thread:$0]  (%p1220_p7), %s1147_s20, 128, %s1145_s9, %s451_s22  }
 0x3ab PF: > { %p653_p8 = scmp.ge.s32.totalorder %s890_s17, 2  ;;  %s477_s16 = sand.u32 1, %s870_s12  }
 0x3ac   : > { %p1221_p9 = scmp.ne.s32.totalorder %s1210_s27, 0  ;;  %s478_s4 = scalar_lea.sflag [#allocation8], %s477_s16 }
 0x3ae   : > { %p649_p10 = pnand %p653_p8, %p1221_p9 }
 0x3b0   : > { %865 = dma.done.wait (!%p649_p10), %s478_s4, 128  }
 0x3b1   : > { %867 = vsyncadd (!%p649_p10), %s478_s4, 4294967168  ;;  %s22_s17 = sadd.s32 1, %s890_s17   ;;  %s1222_s25 = sld [smem:[#allocation18_spill]] }
 0x3b2   : > { %p19_p12 = scmp.ge.s32.totalorder %s22_s17, 10   ;;  %s1223_s15 = sld [smem:[#allocation16_spill]] }
 0x3b3   : > { %s1224_s16 = sld [smem:[#allocation17_spill]]  ;;  %s1225_s12 = smov %s874_s13 }
 0x3b4   : > { %s1226_s13 = smov %s878_s14  ;;  %21 = sbr.rel (!%p19_p12) target bundleno = 10 (0xa), region = 109 }
 0x3b7   : > { %s1227_s14 = smov %s1222_s25 }
 0x3bb   :  { %483 = vsyncpa [#allocation7], 1 }
 0x3bc   :  { %485 = vsyncpa [#allocation7 + $0x1], 1 }
 0x3bd   :  { %486 = vsyncpa [#allocation10], 1 }
 0x3be   :  { %488 = vsyncpa [#allocation10 + $0x1], 1 }
 0x3bf   :  { %489 = vsyncpa [#allocation8], 1 }
 0x3c0   :  { %491 = vsyncpa [#allocation8 + $0x1], 1 }

</bundles_post_ra>
